<compile_context>
chip_gen: v7x
topology: tpu7x:2x2x1
jax: 0.10.0
libtpu: 0.0.40
codegen_flags: <defaults>
</compile_context>

<pallas_src>
import functools

import jax
import jax.numpy as jnp
from jax.experimental import pallas as pl
from jax.experimental.pallas import tpu as pltpu

LANES = 128


def _outconv_kernel(w_ref, b_ref, x_ref, o_ref, *, cin, cout):
    # w_ref: (cout*cin,) f32 SMEM scalars
    # b_ref: (cout,)     f32 SMEM scalars
    # x_ref: (NB, cin, TS, 128)  dense input tile (VMEM)
    # o_ref: (NB, cout, TS, 128) dense output tile (VMEM)
    #
    # Unrolled per-channel VPU multiply-add; cin/cout are tiny static ints.
    for co in range(cout):
        acc = x_ref[:, 0].astype(jnp.float32) * w_ref[co * cin + 0]
        for ci in range(1, cin):
            acc = acc + x_ref[:, ci].astype(jnp.float32) * w_ref[co * cin + ci]
        o_ref[:, co] = (acc + b_ref[co]).astype(o_ref.dtype)


def _largest_divisor_leq(n, k):
    k = max(1, min(n, k))
    for d in range(k, 0, -1):
        if n % d == 0:
            return d
    return 1


def out_conv(x_nchw, weight, bias, *, step_bytes_target=8 << 20):
    """1x1 Conv2d forward (PyTorch OutConv semantics).

    x_nchw: (N, Cin, H, W)
    weight: (Cout, Cin, 1, 1)   (PyTorch Conv2d weight layout)
    bias:   (Cout,)
    returns (N, Cout, H, W)
    """
    N, Cin, H, W = x_nchw.shape
    Cout = weight.shape[0]
    M = H * W

    # ---- layout: keep NCHW; free, contiguous reshapes only -----------------
    x_rows = x_nchw.reshape(N, Cin, M)
    Mp = ((M + LANES - 1) // LANES) * LANES
    if Mp != M:
        # TODO(synk): lane-pad costs one extra HBM pass; only hit when H*W is
        # not a multiple of 128.
        x_rows = jnp.pad(x_rows, ((0, 0), (0, 0), (0, Mp - M)))
    MS = Mp // LANES                               # 128-lane rows per image
    x_blk = x_rows.reshape(N, Cin, MS, LANES)      # dense (sublane, lane) slabs

    w_flat = weight.reshape(Cout * Cin).astype(jnp.float32)   # SMEM scalars
    b_flat = bias.reshape(Cout).astype(jnp.float32)

    # ---- tile selection -----------------------------------------------------
    itemsize = jnp.dtype(x_nchw.dtype).itemsize
    bytes_per_row = (Cin + Cout) * LANES * itemsize       # x + y per sublane row
    ts_budget = max(8, step_bytes_target // bytes_per_row)
    ts_budget = (ts_budget // 8) * 8                      # sublane-aligned

    if MS <= ts_budget:
        ts = MS                                           # full-dim block (OK for any MS)
        nb = _largest_divisor_leq(N, max(1, ts_budget // max(MS, 1)))
    else:
        ts = ts_budget                                    # multiple of 8
        nb = 1

    grid = (N // nb, pl.cdiv(MS, ts))

    cost = pl.CostEstimate(
        flops=2 * N * M * Cin * Cout,
        transcendentals=0,
        bytes_accessed=(N * Cin * M + N * Cout * M) * itemsize
        + (Cout * Cin + Cout) * 4,
    )

    kernel = functools.partial(_outconv_kernel, cin=Cin, cout=Cout)

    y_blk = pl.pallas_call(
        kernel,
        out_shape=jax.ShapeDtypeStruct((N, Cout, MS, LANES), x_nchw.dtype),
        grid=grid,
        in_specs=[
            pl.BlockSpec(memory_space=pltpu.MemorySpace.SMEM),   # weights
            pl.BlockSpec(memory_space=pltpu.MemorySpace.SMEM),   # bias
            pl.BlockSpec((nb, Cin, ts, LANES), lambda n, s: (n, 0, s, 0)),
        ],
        out_specs=pl.BlockSpec((nb, Cout, ts, LANES), lambda n, s: (n, 0, s, 0)),
        compiler_params=pltpu.CompilerParams(
            dimension_semantics=("parallel", "parallel"),
            vmem_limit_bytes=48 * 1024 * 1024,
        ),
        cost_estimate=cost,
    )(w_flat, b_flat, x_blk)

    y_rows = y_blk.reshape(N, Cout, Mp)
    if Mp != M:
        y_rows = y_rows[:, :, :M]
    return y_rows.reshape(N, Cout, H, W)


if __name__ == "__main__":
    key = jax.random.PRNGKey(0)
    kx, kw, kb = jax.random.split(key, 3)

    # Small shapes consistent with OutConv(in_channels=4, out_channels=3)
    N, Cin, H, W = 2, 4, 16, 16
    Cout = 3

    x = jax.random.normal(kx, (N, Cin, H, W), dtype=jnp.float32)
    weight = jax.random.normal(kw, (Cout, Cin, 1, 1), dtype=jnp.float32) * 0.1
    bias = jax.random.normal(kb, (Cout,), dtype=jnp.float32) * 0.1

    y = out_conv(x, weight, bias)
    y = jax.block_until_ready(y)

    # Reference check (plain JAX einsum for the 1x1 conv)
    y_ref = (
        jnp.einsum("nchw,oc->nohw", x, weight.reshape(Cout, Cin))
        + bias[None, :, None, None]
    )
    assert y.shape == (N, Cout, H, W)
    assert jnp.allclose(y, y_ref, atol=1e-5, rtol=1e-5)

    print("KERNEL_OK")
</pallas_src>

<mosaic_0001>
module attributes {stable_mosaic.version = 11 : i64} {
  func.func @_outconv_kernel(%arg0: i32, %arg1: i32, %arg2: memref<12xf32, #tpu.memory_space<smem>>, %arg3: memref<3xf32, #tpu.memory_space<smem>>, %arg4: memref<2x4x2x128xf32, #tpu.memory_space<vmem>>, %arg5: memref<2x3x2x128xf32, #tpu.memory_space<vmem>>) attributes {dimension_semantics = [#tpu.dimension_semantics<parallel>, #tpu.dimension_semantics<parallel>], iteration_bounds = array<i64: 1, 1>, scalar_prefetch = 0 : i64, scratch_operands = 0 : i64, tpu.core_type = #tpu.core_type<tc>, window_params = [{transform_indices = @transform_0, window_bounds = array<i64: 12>}, {transform_indices = @transform_1, window_bounds = array<i64: 3>}, {transform_indices = @transform_2, window_bounds = array<i64: 2, 4, 2, 128>}, {transform_indices = @transform_3, window_bounds = array<i64: 2, 3, 2, 128>}]} {
    %c0 = arith.constant 0 : index
    %c0_0 = arith.constant 0 : index
    %c0_1 = arith.constant 0 : index
    %c0_2 = arith.constant 0 : index
    %0 = vector.load %arg4[%c0, %c0_0, %c0_1, %c0_2] : memref<2x4x2x128xf32, #tpu.memory_space<vmem>>, vector<2x1x2x128xf32>
    %1 = vector.shape_cast %0 : vector<2x1x2x128xf32> to vector<2x2x128xf32>
    %c0_3 = arith.constant 0 : index
    %2 = memref.load %arg2[%c0_3] : memref<12xf32, #tpu.memory_space<smem>>
    %3 = vector.broadcast %2 : f32 to vector<2x2x128xf32>
    %4 = arith.mulf %1, %3 : vector<2x2x128xf32>
    %c0_4 = arith.constant 0 : index
    %c1 = arith.constant 1 : index
    %c0_5 = arith.constant 0 : index
    %c0_6 = arith.constant 0 : index
    %5 = vector.load %arg4[%c0_4, %c1, %c0_5, %c0_6] : memref<2x4x2x128xf32, #tpu.memory_space<vmem>>, vector<2x1x2x128xf32>
    %6 = vector.shape_cast %5 : vector<2x1x2x128xf32> to vector<2x2x128xf32>
    %c1_7 = arith.constant 1 : index
    %7 = memref.load %arg2[%c1_7] : memref<12xf32, #tpu.memory_space<smem>>
    %8 = vector.broadcast %7 : f32 to vector<2x2x128xf32>
    %9 = arith.mulf %6, %8 : vector<2x2x128xf32>
    %10 = arith.addf %4, %9 : vector<2x2x128xf32>
    %c0_8 = arith.constant 0 : index
    %c2 = arith.constant 2 : index
    %c0_9 = arith.constant 0 : index
    %c0_10 = arith.constant 0 : index
    %11 = vector.load %arg4[%c0_8, %c2, %c0_9, %c0_10] : memref<2x4x2x128xf32, #tpu.memory_space<vmem>>, vector<2x1x2x128xf32>
    %12 = vector.shape_cast %11 : vector<2x1x2x128xf32> to vector<2x2x128xf32>
    %c2_11 = arith.constant 2 : index
    %13 = memref.load %arg2[%c2_11] : memref<12xf32, #tpu.memory_space<smem>>
    %14 = vector.broadcast %13 : f32 to vector<2x2x128xf32>
    %15 = arith.mulf %12, %14 : vector<2x2x128xf32>
    %16 = arith.addf %10, %15 : vector<2x2x128xf32>
    %c0_12 = arith.constant 0 : index
    %c3 = arith.constant 3 : index
    %c0_13 = arith.constant 0 : index
    %c0_14 = arith.constant 0 : index
    %17 = vector.load %arg4[%c0_12, %c3, %c0_13, %c0_14] : memref<2x4x2x128xf32, #tpu.memory_space<vmem>>, vector<2x1x2x128xf32>
    %18 = vector.shape_cast %17 : vector<2x1x2x128xf32> to vector<2x2x128xf32>
    %c3_15 = arith.constant 3 : index
    %19 = memref.load %arg2[%c3_15] : memref<12xf32, #tpu.memory_space<smem>>
    %20 = vector.broadcast %19 : f32 to vector<2x2x128xf32>
    %21 = arith.mulf %18, %20 : vector<2x2x128xf32>
    %22 = arith.addf %16, %21 : vector<2x2x128xf32>
    %c0_16 = arith.constant 0 : index
    %23 = memref.load %arg3[%c0_16] : memref<3xf32, #tpu.memory_space<smem>>
    %24 = vector.broadcast %23 : f32 to vector<2x2x128xf32>
    %25 = arith.addf %22, %24 : vector<2x2x128xf32>
    %c0_17 = arith.constant 0 : index
    %c0_18 = arith.constant 0 : index
    %c0_19 = arith.constant 0 : index
    %c0_20 = arith.constant 0 : index
    %26 = vector.load %arg5[%c0_17, %c0_18, %c0_19, %c0_20] : memref<2x3x2x128xf32, #tpu.memory_space<vmem>>, vector<2x1x2x128xf32>
    %27 = vector.shape_cast %26 : vector<2x1x2x128xf32> to vector<2x2x128xf32>
    %28 = vector.shape_cast %25 : vector<2x2x128xf32> to vector<2x1x2x128xf32>
    tpu.vector_store %arg5[%c0_17, %c0_18, %c0_19, %c0_20], %28 {strides = array<i32>} : memref<2x3x2x128xf32, #tpu.memory_space<vmem>>, vector<2x1x2x128xf32>,
    %c0_21 = arith.constant 0 : index
    %c0_22 = arith.constant 0 : index
    %c0_23 = arith.constant 0 : index
    %c0_24 = arith.constant 0 : index
    %29 = vector.load %arg4[%c0_21, %c0_22, %c0_23, %c0_24] : memref<2x4x2x128xf32, #tpu.memory_space<vmem>>, vector<2x1x2x128xf32>
    %30 = vector.shape_cast %29 : vector<2x1x2x128xf32> to vector<2x2x128xf32>
    %c4 = arith.constant 4 : index
    %31 = memref.load %arg2[%c4] : memref<12xf32, #tpu.memory_space<smem>>
    %32 = vector.broadcast %31 : f32 to vector<2x2x128xf32>
    %33 = arith.mulf %30, %32 : vector<2x2x128xf32>
    %c0_25 = arith.constant 0 : index
    %c1_26 = arith.constant 1 : index
    %c0_27 = arith.constant 0 : index
    %c0_28 = arith.constant 0 : index
    %34 = vector.load %arg4[%c0_25, %c1_26, %c0_27, %c0_28] : memref<2x4x2x128xf32, #tpu.memory_space<vmem>>, vector<2x1x2x128xf32>
    %35 = vector.shape_cast %34 : vector<2x1x2x128xf32> to vector<2x2x128xf32>
    %c5 = arith.constant 5 : index
    %36 = memref.load %arg2[%c5] : memref<12xf32, #tpu.memory_space<smem>>
    %37 = vector.broadcast %36 : f32 to vector<2x2x128xf32>
    %38 = arith.mulf %35, %37 : vector<2x2x128xf32>
    %39 = arith.addf %33, %38 : vector<2x2x128xf32>
    %c0_29 = arith.constant 0 : index
    %c2_30 = arith.constant 2 : index
    %c0_31 = arith.constant 0 : index
    %c0_32 = arith.constant 0 : index
    %40 = vector.load %arg4[%c0_29, %c2_30, %c0_31, %c0_32] : memref<2x4x2x128xf32, #tpu.memory_space<vmem>>, vector<2x1x2x128xf32>
    %41 = vector.shape_cast %40 : vector<2x1x2x128xf32> to vector<2x2x128xf32>
    %c6 = arith.constant 6 : index
    %42 = memref.load %arg2[%c6] : memref<12xf32, #tpu.memory_space<smem>>
    %43 = vector.broadcast %42 : f32 to vector<2x2x128xf32>
    %44 = arith.mulf %41, %43 : vector<2x2x128xf32>
    %45 = arith.addf %39, %44 : vector<2x2x128xf32>
    %c0_33 = arith.constant 0 : index
    %c3_34 = arith.constant 3 : index
    %c0_35 = arith.constant 0 : index
    %c0_36 = arith.constant 0 : index
    %46 = vector.load %arg4[%c0_33, %c3_34, %c0_35, %c0_36] : memref<2x4x2x128xf32, #tpu.memory_space<vmem>>, vector<2x1x2x128xf32>
    %47 = vector.shape_cast %46 : vector<2x1x2x128xf32> to vector<2x2x128xf32>
    %c7 = arith.constant 7 : index
    %48 = memref.load %arg2[%c7] : memref<12xf32, #tpu.memory_space<smem>>
    %49 = vector.broadcast %48 : f32 to vector<2x2x128xf32>
    %50 = arith.mulf %47, %49 : vector<2x2x128xf32>
    %51 = arith.addf %45, %50 : vector<2x2x128xf32>
    %c1_37 = arith.constant 1 : index
    %52 = memref.load %arg3[%c1_37] : memref<3xf32, #tpu.memory_space<smem>>
    %53 = vector.broadcast %52 : f32 to vector<2x2x128xf32>
    %54 = arith.addf %51, %53 : vector<2x2x128xf32>
    %c0_38 = arith.constant 0 : index
    %c1_39 = arith.constant 1 : index
    %c0_40 = arith.constant 0 : index
    %c0_41 = arith.constant 0 : index
    %55 = vector.load %arg5[%c0_38, %c1_39, %c0_40, %c0_41] : memref<2x3x2x128xf32, #tpu.memory_space<vmem>>, vector<2x1x2x128xf32>
    %56 = vector.shape_cast %55 : vector<2x1x2x128xf32> to vector<2x2x128xf32>
    %57 = vector.shape_cast %54 : vector<2x2x128xf32> to vector<2x1x2x128xf32>
    tpu.vector_store %arg5[%c0_38, %c1_39, %c0_40, %c0_41], %57 {strides = array<i32>} : memref<2x3x2x128xf32, #tpu.memory_space<vmem>>, vector<2x1x2x128xf32>,
    %c0_42 = arith.constant 0 : index
    %c0_43 = arith.constant 0 : index
    %c0_44 = arith.constant 0 : index
    %c0_45 = arith.constant 0 : index
    %58 = vector.load %arg4[%c0_42, %c0_43, %c0_44, %c0_45] : memref<2x4x2x128xf32, #tpu.memory_space<vmem>>, vector<2x1x2x128xf32>
    %59 = vector.shape_cast %58 : vector<2x1x2x128xf32> to vector<2x2x128xf32>
    %c8 = arith.constant 8 : index
    %60 = memref.load %arg2[%c8] : memref<12xf32, #tpu.memory_space<smem>>
    %61 = vector.broadcast %60 : f32 to vector<2x2x128xf32>
    %62 = arith.mulf %59, %61 : vector<2x2x128xf32>
    %c0_46 = arith.constant 0 : index
    %c1_47 = arith.constant 1 : index
    %c0_48 = arith.constant 0 : index
    %c0_49 = arith.constant 0 : index
    %63 = vector.load %arg4[%c0_46, %c1_47, %c0_48, %c0_49] : memref<2x4x2x128xf32, #tpu.memory_space<vmem>>, vector<2x1x2x128xf32>
    %64 = vector.shape_cast %63 : vector<2x1x2x128xf32> to vector<2x2x128xf32>
    %c9 = arith.constant 9 : index
    %65 = memref.load %arg2[%c9] : memref<12xf32, #tpu.memory_space<smem>>
    %66 = vector.broadcast %65 : f32 to vector<2x2x128xf32>
    %67 = arith.mulf %64, %66 : vector<2x2x128xf32>
    %68 = arith.addf %62, %67 : vector<2x2x128xf32>
    %c0_50 = arith.constant 0 : index
    %c2_51 = arith.constant 2 : index
    %c0_52 = arith.constant 0 : index
    %c0_53 = arith.constant 0 : index
    %69 = vector.load %arg4[%c0_50, %c2_51, %c0_52, %c0_53] : memref<2x4x2x128xf32, #tpu.memory_space<vmem>>, vector<2x1x2x128xf32>
    %70 = vector.shape_cast %69 : vector<2x1x2x128xf32> to vector<2x2x128xf32>
    %c10 = arith.constant 10 : index
    %71 = memref.load %arg2[%c10] : memref<12xf32, #tpu.memory_space<smem>>
    %72 = vector.broadcast %71 : f32 to vector<2x2x128xf32>
    %73 = arith.mulf %70, %72 : vector<2x2x128xf32>
    %74 = arith.addf %68, %73 : vector<2x2x128xf32>
    %c0_54 = arith.constant 0 : index
    %c3_55 = arith.constant 3 : index
    %c0_56 = arith.constant 0 : index
    %c0_57 = arith.constant 0 : index
    %75 = vector.load %arg4[%c0_54, %c3_55, %c0_56, %c0_57] : memref<2x4x2x128xf32, #tpu.memory_space<vmem>>, vector<2x1x2x128xf32>
    %76 = vector.shape_cast %75 : vector<2x1x2x128xf32> to vector<2x2x128xf32>
    %c11 = arith.constant 11 : index
    %77 = memref.load %arg2[%c11] : memref<12xf32, #tpu.memory_space<smem>>
    %78 = vector.broadcast %77 : f32 to vector<2x2x128xf32>
    %79 = arith.mulf %76, %78 : vector<2x2x128xf32>
    %80 = arith.addf %74, %79 : vector<2x2x128xf32>
    %c2_58 = arith.constant 2 : index
    %81 = memref.load %arg3[%c2_58] : memref<3xf32, #tpu.memory_space<smem>>
    %82 = vector.broadcast %81 : f32 to vector<2x2x128xf32>
    %83 = arith.addf %80, %82 : vector<2x2x128xf32>
    %c0_59 = arith.constant 0 : index
    %c2_60 = arith.constant 2 : index
    %c0_61 = arith.constant 0 : index
    %c0_62 = arith.constant 0 : index
    %84 = vector.load %arg5[%c0_59, %c2_60, %c0_61, %c0_62] : memref<2x3x2x128xf32, #tpu.memory_space<vmem>>, vector<2x1x2x128xf32>
    %85 = vector.shape_cast %84 : vector<2x1x2x128xf32> to vector<2x2x128xf32>
    %86 = vector.shape_cast %83 : vector<2x2x128xf32> to vector<2x1x2x128xf32>
    tpu.vector_store %arg5[%c0_59, %c2_60, %c0_61, %c0_62], %86 {strides = array<i32>} : memref<2x3x2x128xf32, #tpu.memory_space<vmem>>, vector<2x1x2x128xf32>,
    return
  }
  func.func @transform_0(%arg0: i32, %arg1: i32) -> i32 {
    %c0_i32 = arith.constant 0 : i32
    %c0_i32_0 = arith.constant 0 : i32
    return %c0_i32 : i32
  }
  func.func @transform_1(%arg0: i32, %arg1: i32) -> i32 {
    %c0_i32 = arith.constant 0 : i32
    %c0_i32_0 = arith.constant 0 : i32
    return %c0_i32 : i32
  }
  func.func @transform_2(%arg0: i32, %arg1: i32) -> (i32, i32, i32, i32) {
    %c0_i32 = arith.constant 0 : i32
    %c0_i32_0 = arith.constant 0 : i32
    %c0_i32_1 = arith.constant 0 : i32
    return %arg0, %c0_i32, %arg1, %c0_i32_0 : i32, i32, i32, i32
  }
  func.func @transform_3(%arg0: i32, %arg1: i32) -> (i32, i32, i32, i32) {
    %c0_i32 = arith.constant 0 : i32
    %c0_i32_0 = arith.constant 0 : i32
    %c0_i32_1 = arith.constant 0 : i32
    return %arg0, %c0_i32, %arg1, %c0_i32_0 : i32, i32, i32, i32
  }
}

</mosaic_0001>

<bundles_post_ra>
// kernel: tpu_custom_call.1
= control target key start
LH: loop header
LB: loop body
LE: loop exit
PB: predicated region body
PF: predicated region fallthrough
CT: control target
= control target key end

     0   :  { %8 = vsyncpa [#allocation5], 0  ;;  %s384_s0 = inlined_call_operand.hbm [shape: f32[12], index: 0, kind: input, shape index: {}]   ;;  %s385_s1 = inlined_call_operand.vmem [shape: f32[3], index: 1, kind: input, shape index: {}]   ;;  %s386_s2 = inlined_call_operand.hbm [shape: f32[2,4,2,128], index: 2, kind: input, shape index: {}]   ;;  %s387_s3 = inlined_call_operand.hbm [shape: f32[2,3,2,128], index: 3, kind: output, shape index: {}]  }
   0x1   :  { %9 = vsyncpa [#allocation6], 0 }
   0x2   :  { %10 = vsyncpa [#allocation3], 0 }
   0x3   :  { %11 = vsyncpa [#allocation4], 0  ;;  %s26_s14 = sshll.u32 %s385_s1, 4  ;;  %s203_s17 = scalar_lea.hbm %s384_s0, 16  ;;  %s27_s14 = int_to_ptr.vmem [resolvable:$true] %s26_s14 }
   0x4   :  { %p204_p0 = scmp.ne.s32.totalorder %s384_s0, %s203_s17  ;;  %p207_p1 = scmp.lt.u32.totalorder %s203_s17, %s384_s0 }
   0x6   :  { %p209_p2 = pnand %p207_p1, %p204_p0 }
   0x8   :  { %212 = shalt.err (!%p209_p2)
}
   0x9   :  { %s277_s22 = smov [#allocation2]   ;;  %s213_s1 = scalar_lea.vmem %s27_s14, 16 }
   0xa   :  { %19 = dma.hbm_to_smem %s384_s0, 16, %s277_s22, [#allocation5]  }
   0xb   :  { %p214_p3 = scmp.ne.s32.totalorder %s27_s14, %s213_s1  ;;  %p218_p4 = scmp.lt.s32.totalorder %s27_s14, %s27_s14 }
   0xc   :  { %p219_p5 = scmp.lt.s32.totalorder %s213_s1, %s213_s1 }
   0xe   :  { %p220_p6 = por %p219_p5, %p218_p4 }
  0x10   :  { %p221_p7 = pnand %p220_p6, %p214_p3 }
  0x12   :  { %224 = shalt.err (!%p221_p7)
}
  0x13   :  { %s278_s25 = smov [#allocation7]   ;;  %s279_s26 = smov [#allocation8]  }
  0x14   :  { %29 = dma.vmem_to_smem %s27_s14, 16, %s278_s25, [#allocation6]  }
  0x15   :  { %s35_s27 = sshll.u32 %s279_s26, 4  ;;  %s225_s30 = scalar_lea.hbm %s386_s2, 256  ;;  %s36_s27 = int_to_ptr.vmem [resolvable:$true] %s35_s27 }
  0x16   :  { %p226_p8 = scmp.ne.s32.totalorder %s386_s2, %s225_s30  ;;  %p229_p9 = scmp.lt.u32.totalorder %s225_s30, %s386_s2 }
  0x18   :  { %p231_p10 = pnand %p229_p9, %p226_p8 }
  0x1a   :  { %234 = shalt.err (!%p231_p10)
}
  0x1b   :  { %s235_s7 = scalar_lea.vmem %s36_s27, 256  ;;  %p240_p12 = scmp.lt.s32.totalorder %s36_s27, %s36_s27 }
  0x1c   :  { %p236_p11 = scmp.ne.s32.totalorder %s36_s27, %s235_s7  ;;  %p241_p13 = scmp.lt.s32.totalorder %s235_s7, %s235_s7 }
  0x1e   :  { %p242_p0 = por %p241_p13, %p240_p12 }
  0x20   :  { %p243_p1 = pnand %p242_p0, %p236_p11 }
  0x22   :  { %246 = shalt.err (!%p243_p1)
}
  0x23   :  { %s280_s8 = smov 32   ;;  %s281_s9 = smov 2  }
  0x24   :  { %41 = dma.hbm_to_vmem [thread:$0]  %s386_s2, 256, %s36_s27, [#allocation3], %s280_s8, %s280_s8, %s281_s9  }
  0x25   :  { %269 = dma.done.wait [#allocation5], 16  }
  0x26   :  { %270 = vsyncadd [#allocation5], 4294967280 }
  0x27   :  { %271 = dma.done.wait [#allocation6], 16  }
  0x28   :  { %272 = vsyncadd [#allocation6], 4294967280 }
  0x29   :  { %273 = dma.done.wait [#allocation3], 256  }
  0x2a   :  { %274 = vsyncadd [#allocation3], 4294967040 }
  0x2b   :  { %51 = sfence }
  0x2c   :  { %s54_s12 = sld [smem:[#allocation2]]  ;;  %s184_s13 = sld [smem:[#allocation2 + $0x1]]  ;;  %v52_v0 = vld [vmem:[#allocation8] sm:$0x3]  ;;  %v59_v1 = vld [vmem:[#allocation8 + $0x2] sm:$0x3] }
  0x2d   :  { %s185_s14 = sld [smem:[#allocation2 + $0x2]]  ;;  %s333_s15 = sld [smem:[#allocation2 + $0x3]]  ;;  %v53_v2 = vld [vmem:[#allocation8 + $0x8] sm:$0x3]  ;;  %v68_v3 = vld [vmem:[#allocation8 + $0x4] sm:$0x3] }
  0x2e   :  { %s335_s16 = sld [smem:[#allocation7]]  ;;  %s337_s17 = sld [smem:[#allocation2 + $0x4]]  ;;  %v60_v4 = vld [vmem:[#allocation8 + $0xa] sm:$0x3]  ;;  %v69_v6 = vld [vmem:[#allocation8 + $0xc] sm:$0x3] }
  0x2f   :  { %s339_s2 = sld [smem:[#allocation2 + $0x5]]  ;;  %s341_s18 = sld [smem:[#allocation2 + $0x6]]  ;;  %v77_v10 = vld [vmem:[#allocation8 + $0x6] sm:$0x3]  ;;  %v78_v12 = vld [vmem:[#allocation8 + $0xe] sm:$0x3] }
  0x30   :  { %s343_s19 = sld [smem:[#allocation2 + $0x7]]  ;;  %s345_s20 = sld [smem:[#allocation7 + $0x1]]  ;;  %v91_v16 = vld [vmem:[#allocation8] sm:$0x3]  ;;  %v92_v17 = vld [vmem:[#allocation8 + $0x8] sm:$0x3] }
  0x31   :  { %v97_v21 = vld [vmem:[#allocation8 + $0x2] sm:$0x3]  ;;  %s349_s21 = sld [smem:[#allocation2 + $0x8]]  ;;  %s351_s22 = sld [smem:[#allocation2 + $0x9]]  ;;  %v105_v26 = vld [vmem:[#allocation8 + $0x4] sm:$0x3] }
  0x32   :  { %v55_v5 = vstv %s54_s12  ;;  %v62_v8 = vstv %s184_s13  ;;  %v113_v27 = vld [vmem:[#allocation8 + $0x6] sm:$0x3]  ;;  %s354_s23 = sld [smem:[#allocation2 + $0xa]]  ;;  %v98_v32 = vld [vmem:[#allocation8 + $0xa] sm:$0x3]  ;;  %s357_s24 = sld [smem:[#allocation2 + $0xb]] }
  0x33   :  { %v56_v7 = vmul.f32 %v55_v5, %v52_v0  ;;  %v71_v9 = vstv %s185_s14  ;;  %v57_v11 = vmul.f32 %v55_v5, %v53_v2  ;;  %v63_v13 = vmul.f32 %v62_v8, %v59_v1  ;;  %v106_v33 = vld [vmem:[#allocation8 + $0xc] sm:$0x3]  ;;  %v114_v38 = vld [vmem:[#allocation8 + $0xe] sm:$0x3]  ;;  %v128_v43 = vld [vmem:[#allocation8] sm:$0x3] }
  0x34   :  { %v72_v14 = vmul.f32 %v71_v9, %v68_v3  ;;  %v80_v15 = vstv %s333_s15  ;;  %v86_v18 = vstv %s335_s16  ;;  %v64_v19 = vmul.f32 %v62_v8, %v60_v4  ;;  %v134_v48 = vld [vmem:[#allocation8 + $0x2] sm:$0x3]  ;;  %s362_s1 = sld [smem:[#allocation7 + $0x2]]  ;;  %v142_v53 = vld [vmem:[#allocation8 + $0x4] sm:$0x3]  ;;  %s282_s25 = smov [#allocation9]  }
  0x35   :  { %v73_v20 = vmul.f32 %v71_v9, %v69_v6  ;;  %v65_v22 = vadd.f32 %v63_v13, %v56_v7  ;;  %v81_v23 = vmul.f32 %v80_v15, %v77_v10  ;;  %v82_v24 = vmul.f32 %v80_v15, %v78_v12  ;;  %v150_v58 = vld [vmem:[#allocation8 + $0x6] sm:$0x3]  ;;  %v129_v59 = vld [vmem:[#allocation8 + $0x8] sm:$0x3]  ;;  %v135_v60 = vld [vmem:[#allocation8 + $0xa] sm:$0x3] }
  0x36   :  { %v94_v25 = vstv %s337_s17  ;;  %v66_v28 = vadd.f32 %v64_v19, %v57_v11  ;;  %v100_v30 = vstv %s339_s2  ;;  %v108_v36 = vstv %s341_s18  ;;  %v143_v1 = vld [vmem:[#allocation8 + $0xc] sm:$0x3]  ;;  %v151_v5 = vld [vmem:[#allocation8 + $0xe] sm:$0x3]  ;;  %s170_s26 = sshll.u32 %s282_s25, 4  ;;  %s171_s26 = int_to_ptr.vmem [resolvable:$true] %s170_s26 }
  0x37   :  { %v95_v29 = vmul.f32 %v94_v25, %v91_v16  ;;  %v96_v31 = vmul.f32 %v94_v25, %v92_v17  ;;  %v74_v34 = vadd.f32 %v72_v14, %v65_v22  ;;  %v101_v35 = vmul.f32 %v100_v30, %v97_v21  ;;  %s247_s27 = scalar_lea.vmem %s171_s26, 192  ;;  %p252_p3 = scmp.lt.s32.totalorder %s171_s26, %s171_s26 }
  0x38   :  { %v116_v37 = vstv %s343_s19  ;;  %v75_v39 = vadd.f32 %v73_v20, %v66_v28  ;;  %v109_v40 = vmul.f32 %v108_v36, %v105_v26  ;;  %v122_v42 = vstv %s345_s20  ;;  %p248_p2 = scmp.ne.s32.totalorder %s171_s26, %s247_s27  ;;  %p253_p4 = scmp.lt.s32.totalorder %s247_s27, %s247_s27 }
  0x39   :  { %v117_v41 = vmul.f32 %v116_v37, %v113_v27  ;;  %v83_v44 = vadd.f32 %v81_v23, %v74_v34  ;;  %v103_v45 = vadd.f32 %v101_v35, %v95_v29  ;;  %v102_v46 = vmul.f32 %v100_v30, %v98_v32 }
  0x3a   :  { %v110_v47 = vmul.f32 %v108_v36, %v106_v33  ;;  %v84_v49 = vadd.f32 %v82_v24, %v75_v39  ;;  %v118_v50 = vmul.f32 %v116_v37, %v114_v38  ;;  %v131_v51 = vstv %s349_s21  ;;  %p254_p5 = por %p253_p4, %p252_p3 }
  0x3b   :  { %v137_v52 = vstv %s351_s22  ;;  %v87_v54 = vadd.f32 %v86_v18, %v83_v44  ;;  %v111_v55 = vadd.f32 %v109_v40, %v103_v45  ;;  %v104_v56 = vadd.f32 %v102_v46, %v96_v31 }
  0x3c   :  { %v132_v57 = vmul.f32 %v131_v51, %v128_v43  ;;  %v88_v61 = vadd.f32 %v86_v18, %v84_v49  ;;  %v138_v62 = vmul.f32 %v137_v52, %v134_v48  ;;  %v145_v63 = vstv %s354_s23  ;;  %p255_p6 = pnand %p254_p5, %p248_p2 }
  0x3d   :  { %v153_v0 = vstv %s357_s24  ;;  %89 = vst [vmem:[#allocation9] sm:$0x3] %v87_v54  ;;  %v119_v2 = vadd.f32 %v117_v41, %v111_v55  ;;  %v112_v3 = vadd.f32 %v110_v47, %v104_v56  ;;  %v146_v4 = vmul.f32 %v145_v63, %v142_v53 }
  0x3e   :  { %90 = vst [vmem:[#allocation9 + $0x6] sm:$0x3] %v88_v61  ;;  %v140_v6 = vadd.f32 %v138_v62, %v132_v57  ;;  %v154_v7 = vmul.f32 %v153_v0, %v150_v58  ;;  %v133_v8 = vmul.f32 %v131_v51, %v129_v59  ;;  %v139_v9 = vmul.f32 %v137_v52, %v135_v60 }
  0x3f   :  { %v123_v10 = vadd.f32 %v122_v42, %v119_v2  ;;  %v120_v11 = vadd.f32 %v118_v50, %v112_v3  ;;  %v147_v12 = vmul.f32 %v145_v63, %v143_v1  ;;  %v155_v15 = vmul.f32 %v153_v0, %v151_v5 }
  0x40   :  { %v148_v13 = vadd.f32 %v146_v4, %v140_v6  ;;  %v141_v14 = vadd.f32 %v139_v9, %v133_v8  ;;  %v159_v17 = vstv %s362_s1 }
  0x41   :  { %126 = vst [vmem:[#allocation9 + $0x2] sm:$0x3] %v123_v10  ;;  %v124_v16 = vadd.f32 %v122_v42, %v120_v11 }
  0x42   :  { %v156_v18 = vadd.f32 %v154_v7, %v148_v13  ;;  %v149_v19 = vadd.f32 %v147_v12, %v141_v14 }
  0x43   :  { %127 = vst [vmem:[#allocation9 + $0x8] sm:$0x3] %v124_v16 }
  0x44   :  { %v160_v20 = vadd.f32 %v159_v17, %v156_v18  ;;  %v157_v21 = vadd.f32 %v155_v15, %v149_v19 }
  0x46   :  { %163 = vst [vmem:[#allocation9 + $0x4] sm:$0x3] %v160_v20  ;;  %v161_v22 = vadd.f32 %v159_v17, %v157_v21 }
  0x48   :  { %164 = vst [vmem:[#allocation9 + $0xa] sm:$0x3] %v161_v22 }
  0x49   :  { %258 = shalt.err (!%p255_p6)
}
  0x4a   :  { %s259_s30 = scalar_lea.hbm %s387_s3, 192 }
  0x4b   :  { %p260_p7 = scmp.ne.s32.totalorder %s387_s3, %s259_s30  ;;  %p263_p8 = scmp.lt.u32.totalorder %s259_s30, %s387_s3 }
  0x4d   :  { %p265_p9 = pnand %p263_p8, %p260_p7 }
  0x4f   :  { %268 = shalt.err (!%p265_p9)
}
  0x50   :  { %176 = dma.vmem_to_hbm [thread:$0]  %s171_s26, 192, %s387_s3, [#allocation4], %s280_s8, %s280_s8, %s281_s9  }
  0x51   :  { %275 = dma.done.wait [#allocation4], 192  }
  0x52   :  { %276 = vsyncadd [#allocation4], 4294967104 }
  0x53   :  { %180 = vsyncpa [#allocation3], 1 }
  0x54   :  { %181 = vsyncpa [#allocation4], 1 }
  0x55   :  { %182 = vsyncpa [#allocation5], 1 }
  0x56   :  { %183 = vsyncpa [#allocation6], 1 }

</bundles_post_ra>
